<compile_context>
chip_gen: v6e
topology: v6e:2x2x1
jax: 0.10.0
libtpu: 0.0.40
codegen_flags: <defaults>
</compile_context>

<pallas_src>
import jax
import jax.numpy as jnp
from jax.experimental import pallas as pl
from jax.experimental.pallas import tpu as pltpu

LANE = 128
ALIGN = 16        # bf16 sublane packing (also satisfies f32/int32 tiles of 8)
MAX_TB = 1024     # big enough to amortize per-step overhead, tiny vs VMEM


def _round_up(x, m):
    return ((x + m - 1) // m) * m


# ---------------------------------------------------------------------------
# Pallas kernel: 3-layer MLP (ReLU, ReLU, linear) + fused argmax
# ---------------------------------------------------------------------------
def _actor_mlp_kernel(x_ref, w1_ref, b1_ref, w2_ref, b2_ref, w3_ref, b3_ref,
                      logits_ref, actions_ref):
    # Layer 1: ReLU(x @ W1' + b1')  (normalization folded into W1'/b1').
    # bf16 operands -> native MXU path; f32 accumulation; bias/ReLU in f32.
    h = jnp.dot(x_ref[...], w1_ref[...],
                preferred_element_type=jnp.float32) + b1_ref[...]
    h = jnp.maximum(h, 0.0)

    # Layer 2: ReLU(h @ W2 + b2)  (hidden2 zero-padded to lane width; exact).
    h = jnp.dot(h.astype(jnp.bfloat16), w2_ref[...],
                preferred_element_type=jnp.float32) + b2_ref[...]
    h = jnp.maximum(h, 0.0)

    # Output layer.  Action dim is lane-padded for the matmul only; padded
    # lanes of b3 hold a finite -1e30 sentinel so no argmax mask is needed.
    logits = jnp.dot(h.astype(jnp.bfloat16), w3_ref[...],
                     preferred_element_type=jnp.float32) + b3_ref[...]

    # Only the valid action lanes go back to HBM (unpadded output block).
    n_valid = logits_ref.shape[-1]
    logits_ref[...] = logits[:, :n_valid]

    # Fused argmax (first-index tie-break, matches torch.argmax).  Reductions
    # use the XLU slot, which is otherwise idle here.
    col = jax.lax.broadcasted_iota(jnp.int32, logits.shape, 1)
    row_max = jnp.max(logits, axis=-1, keepdims=True)
    idx = jnp.where(logits == row_max, col, jnp.int32(logits.shape[-1]))
    actions_ref[...] = jnp.min(idx, axis=-1, keepdims=True)


# ---------------------------------------------------------------------------
# Host-side parameter preparation: fold normalization, pad, cast to bf16
# ---------------------------------------------------------------------------
def prepare_params(params):
    """params: [(W1_t, b1), (W2_t, b2), (W3_t, b3)], W_t shaped (in, out),
    b shaped (1, out).  Returns bf16 lane-padded weights + f32 biases with the
    normalization (obs - 3.5)/4.5 folded into layer 1, and num_actions."""
    (w1, b1), (w2, b2), (w3, b3) = params

    # Fold (obs - 3.5) / 4.5 into layer 1 (exact up to rounding):
    #   ((x - 3.5)/4.5) @ W1 + b1 == x @ (W1/4.5) + (b1 - (3.5/4.5)*sum(W1, 0))
    w1f = w1 * (1.0 / 4.5)
    b1f = (b1 - (3.5 / 4.5) * jnp.sum(w1, axis=0, keepdims=True)).astype(jnp.float32)

    h1 = w1f.shape[1]
    h2 = w2.shape[1]
    num_actions = w3.shape[1]
    h2p = _round_up(h2, LANE)
    ap = _round_up(num_actions, LANE)

    w2p = jnp.zeros((h1, h2p), jnp.float32).at[:, :h2].set(w2)
    b2p = jnp.zeros((1, h2p), jnp.float32).at[:, :h2].set(b2)
    w3p = jnp.zeros((h2p, ap), jnp.float32).at[:h2, :num_actions].set(w3)
    # Padded action lanes get a large *finite* negative sentinel so the
    # in-kernel argmax needs no validity mask (and no NaN risk).
    b3p = jnp.full((1, ap), -1e30, jnp.float32).at[:, :num_actions].set(b3)

    # bf16 weights: 2-3x MXU throughput, half the weight DMA / VMEM residency.
    return ((w1f.astype(jnp.bfloat16), b1f),
            (w2p.astype(jnp.bfloat16), b2p.astype(jnp.float32)),
            (w3p.astype(jnp.bfloat16), b3p),
            num_actions)


# ---------------------------------------------------------------------------
# Wrapper: batch-gridded pallas_call
# ---------------------------------------------------------------------------
def actor_forward(obs_flat, prepared):
    """obs_flat: (B, D_in) bf16/f32.  Returns (logits (B, num_actions) f32,
    actions (B,) int32)."""
    (w1, b1), (w2, b2), (w3, b3), num_actions = prepared
    B, d_in = obs_flat.shape

    # Batch tile: single full-extent block for small B (always legal, no
    # padding); otherwise a 16-aligned tile giving >= 2 "parallel" grid steps
    # so v7x's second TensorCore gets work, capped at MAX_TB.  A ragged final
    # block (B not a multiple of TB) is handled by Pallas with masked writes —
    # no host-side zero-pad copy of obs.
    if B <= 2 * ALIGN:
        TB = B
    else:
        TB = min(MAX_TB, _round_up(pl.cdiv(B, 2), ALIGN))
    grid = (pl.cdiv(B, TB),)

    h1 = w1.shape[1]
    h2p = w2.shape[1]
    ap = w3.shape[1]
    flops = 2 * B * (d_in * h1 + h1 * h2p + h2p * ap)
    bytes_accessed = (2 * (obs_flat.size + w1.size + w2.size + w3.size)   # bf16
                      + 4 * (b1.size + b2.size + b3.size)                 # f32
                      + 4 * B * num_actions + 4 * B)                      # outs

    # Weights/biases stay VMEM-resident across grid steps (constant index_map).
    # (Single-buffering them via pipeline_mode would save ~80 KB VMEM; skipped
    # since weight residency is already negligible at these sizes.)
    logits, actions = pl.pallas_call(
        _actor_mlp_kernel,
        grid=grid,
        in_specs=[
            pl.BlockSpec((TB, d_in), lambda i: (i, 0)),
            pl.BlockSpec(w1.shape, lambda i: (0, 0)),
            pl.BlockSpec(b1.shape, lambda i: (0, 0)),
            pl.BlockSpec(w2.shape, lambda i: (0, 0)),
            pl.BlockSpec(b2.shape, lambda i: (0, 0)),
            pl.BlockSpec(w3.shape, lambda i: (0, 0)),
            pl.BlockSpec(b3.shape, lambda i: (0, 0)),
        ],
        out_specs=(
            pl.BlockSpec((TB, num_actions), lambda i: (i, 0)),
            pl.BlockSpec((TB, 1), lambda i: (i, 0)),
        ),
        out_shape=(
            jax.ShapeDtypeStruct((B, num_actions), jnp.float32),
            jax.ShapeDtypeStruct((B, 1), jnp.int32),
        ),
        compiler_params=pltpu.CompilerParams(
            dimension_semantics=("parallel",)),
        cost_estimate=pl.CostEstimate(flops=flops, transcendentals=0,
                                      bytes_accessed=bytes_accessed),
    )(obs_flat, w1, b1, w2, b2, w3, b3)

    return logits, actions[:, 0]


def act(obs, prepared, hidden_states=None):
    """Mirrors SimpleActorPolicy.act: flatten obs, forward, argmax (fused)."""
    # TODO(synk): hidden_states is unused by the original module as well.
    obs_flat = obs.reshape(obs.shape[0], -1).astype(jnp.bfloat16)
    logits, actions = actor_forward(obs_flat, prepared)
    return actions, logits


# ---------------------------------------------------------------------------
# Deterministic parameter init (matches nn.Linear shapes; synthetic values)
# ---------------------------------------------------------------------------
def init_params(key, layers):
    """layers = [obs_dim, hidden..., num_actions].
    Returns list of (W_t, b) with W_t of shape (in, out), b of shape (1, out)."""
    params = []
    for fan_in, fan_out in zip(layers[:-1], layers[1:]):
        key, kw, kb = jax.random.split(key, 3)
        bound = 1.0 / jnp.sqrt(fan_in)
        w_t = jax.random.uniform(kw, (fan_in, fan_out), jnp.float32, -bound, bound)
        b = jax.random.uniform(kb, (1, fan_out), jnp.float32, -bound, bound)
        params.append((w_t, b))
    return params


if __name__ == "__main__":
    # layers = [obs_dim, hidden1, hidden2, num_actions]
    layers_cfg = [64, 128, 32, 8]
    B = 8
    num_actions = layers_cfg[-1]

    key = jax.random.PRNGKey(0)
    key, k_obs = jax.random.split(key)
    # Raw observations with trailing structure; act() flattens them: 4*4*4=64.
    obs = jax.random.uniform(k_obs, (B, 4, 4, 4), jnp.float32, 0.0, 8.0)

    params = init_params(key, layers_cfg)
    prepared = prepare_params(params)

    actions, logits = act(obs, prepared)
    jax.block_until_ready((actions, logits))

    assert logits.shape == (B, num_actions)
    assert actions.shape == (B,)

    # (1) Fused argmax matches argmax of the kernel's own logits exactly.
    assert jnp.array_equal(actions, jnp.argmax(logits, axis=-1))

    # (2) bf16-emulated reference (same casts as the kernel): tight agreement.
    (w1b, b1f), (w2b, b2p), (w3b, b3p), _ = prepared
    xb = obs.reshape(B, -1).astype(jnp.bfloat16)
    h = jnp.maximum(jnp.dot(xb, w1b, preferred_element_type=jnp.float32) + b1f, 0.0)
    h = jnp.maximum(jnp.dot(h.astype(jnp.bfloat16), w2b,
                            preferred_element_type=jnp.float32) + b2p, 0.0)
    ref_bf16 = (jnp.dot(h.astype(jnp.bfloat16), w3b,
                        preferred_element_type=jnp.float32)
                + b3p)[:, :num_actions]
    assert jnp.allclose(logits, ref_bf16, atol=2e-3, rtol=2e-3)

    # (3) Full-precision reference of the original module math (explicit
    # normalization, no padding): loose tolerance because matmul operands are
    # bf16 in the kernel.
    x = obs.reshape(B, -1)
    x = (x - 3.5) / 4.5
    for (w, b) in params[:-1]:
        x = jnp.maximum(x @ w + b, 0.0)
    ref_f32 = x @ params[-1][0] + params[-1][1]
    assert jnp.allclose(logits, ref_f32, atol=0.25, rtol=0.1)

    print("KERNEL_OK")
</pallas_src>

<mosaic_0001>
module attributes {stable_mosaic.version = 11 : i64} {
  func.func @_actor_mlp_kernel(%arg0: i32, %arg1: memref<8x64xbf16, #tpu.memory_space<vmem>>, %arg2: memref<64x128xbf16, #tpu.memory_space<vmem>>, %arg3: memref<1x128xf32, #tpu.memory_space<vmem>>, %arg4: memref<128x128xbf16, #tpu.memory_space<vmem>>, %arg5: memref<1x128xf32, #tpu.memory_space<vmem>>, %arg6: memref<128x128xbf16, #tpu.memory_space<vmem>>, %arg7: memref<1x128xf32, #tpu.memory_space<vmem>>, %arg8: memref<8x8xf32, #tpu.memory_space<vmem>>, %arg9: memref<8x1xi32, #tpu.memory_space<vmem>>) attributes {dimension_semantics = [#tpu.dimension_semantics<parallel>], iteration_bounds = array<i64: 1>, scalar_prefetch = 0 : i64, scratch_operands = 0 : i64, tpu.core_type = #tpu.core_type<tc>, window_params = [{transform_indices = @transform_0, window_bounds = array<i64: 8, 64>}, {pipeline_mode = #tpu.pipeline_mode<synchronous>, transform_indices = @transform_1, window_bounds = array<i64: 64, 128>}, {pipeline_mode = #tpu.pipeline_mode<synchronous>, transform_indices = @transform_2, window_bounds = array<i64: 1, 128>}, {pipeline_mode = #tpu.pipeline_mode<synchronous>, transform_indices = @transform_3, window_bounds = array<i64: 128, 128>}, {pipeline_mode = #tpu.pipeline_mode<synchronous>, transform_indices = @transform_4, window_bounds = array<i64: 1, 128>}, {pipeline_mode = #tpu.pipeline_mode<synchronous>, transform_indices = @transform_5, window_bounds = array<i64: 128, 128>}, {pipeline_mode = #tpu.pipeline_mode<synchronous>, transform_indices = @transform_6, window_bounds = array<i64: 1, 128>}, {transform_indices = @transform_7, window_bounds = array<i64: 8, 8>}, {transform_indices = @transform_8, window_bounds = array<i64: 8, 1>}]} {
    %c0 = arith.constant 0 : index
    %c0_0 = arith.constant 0 : index
    %0 = vector.load %arg1[%c0, %c0_0] : memref<8x64xbf16, #tpu.memory_space<vmem>>, vector<8x64xbf16>
    %c0_1 = arith.constant 0 : index
    %c0_2 = arith.constant 0 : index
    %1 = vector.load %arg2[%c0_1, %c0_2] : memref<64x128xbf16, #tpu.memory_space<vmem>>, vector<64x128xbf16>
    %cst = arith.constant dense<0.000000e+00> : vector<8x128xf32>
    %2 = tpu.matmul %0, %1, %cst {dimension_numbers = #tpu.dot_dimension_numbers<[1], [0], [0], [1], [0, 0, 1, 1], [], []>} : vector<8x64xbf16>, vector<64x128xbf16>, vector<8x128xf32> -> vector<8x128xf32>
    %c0_3 = arith.constant 0 : index
    %c0_4 = arith.constant 0 : index
    %3 = vector.load %arg3[%c0_3, %c0_4] : memref<1x128xf32, #tpu.memory_space<vmem>>, vector<1x128xf32>
    %4 = vector.broadcast %3 : vector<1x128xf32> to vector<8x128xf32>
    %5 = arith.addf %2, %4 : vector<8x128xf32>
    %cst_5 = arith.constant 0.000000e+00 : f32
    %6 = vector.broadcast %cst_5 : f32 to vector<8x128xf32>
    %7 = arith.maximumf %5, %6 : vector<8x128xf32>
    %8 = arith.truncf %7 : vector<8x128xf32> to vector<8x128xbf16>
    %c0_6 = arith.constant 0 : index
    %c0_7 = arith.constant 0 : index
    %9 = vector.load %arg4[%c0_6, %c0_7] : memref<128x128xbf16, #tpu.memory_space<vmem>>, vector<128x128xbf16>
    %cst_8 = arith.constant dense<0.000000e+00> : vector<8x128xf32>
    %10 = tpu.matmul %8, %9, %cst_8 {dimension_numbers = #tpu.dot_dimension_numbers<[1], [0], [0], [1], [0, 0, 1, 1], [], []>} : vector<8x128xbf16>, vector<128x128xbf16>, vector<8x128xf32> -> vector<8x128xf32>
    %c0_9 = arith.constant 0 : index
    %c0_10 = arith.constant 0 : index
    %11 = vector.load %arg5[%c0_9, %c0_10] : memref<1x128xf32, #tpu.memory_space<vmem>>, vector<1x128xf32>
    %12 = vector.broadcast %11 : vector<1x128xf32> to vector<8x128xf32>
    %13 = arith.addf %10, %12 : vector<8x128xf32>
    %cst_11 = arith.constant 0.000000e+00 : f32
    %14 = vector.broadcast %cst_11 : f32 to vector<8x128xf32>
    %15 = arith.maximumf %13, %14 : vector<8x128xf32>
    %16 = arith.truncf %15 : vector<8x128xf32> to vector<8x128xbf16>
    %c0_12 = arith.constant 0 : index
    %c0_13 = arith.constant 0 : index
    %17 = vector.load %arg6[%c0_12, %c0_13] : memref<128x128xbf16, #tpu.memory_space<vmem>>, vector<128x128xbf16>
    %cst_14 = arith.constant dense<0.000000e+00> : vector<8x128xf32>
    %18 = tpu.matmul %16, %17, %cst_14 {dimension_numbers = #tpu.dot_dimension_numbers<[1], [0], [0], [1], [0, 0, 1, 1], [], []>} : vector<8x128xbf16>, vector<128x128xbf16>, vector<8x128xf32> -> vector<8x128xf32>
    %c0_15 = arith.constant 0 : index
    %c0_16 = arith.constant 0 : index
    %19 = vector.load %arg7[%c0_15, %c0_16] : memref<1x128xf32, #tpu.memory_space<vmem>>, vector<1x128xf32>
    %20 = vector.broadcast %19 : vector<1x128xf32> to vector<8x128xf32>
    %21 = arith.addf %18, %20 : vector<8x128xf32>
    %22 = vector.extract_strided_slice %21 {offsets = [0, 0], sizes = [8, 8], strides = [1, 1]} : vector<8x128xf32> to vector<8x8xf32>
    %c0_17 = arith.constant 0 : index
    %c0_18 = arith.constant 0 : index
    %23 = vector.load %arg8[%c0_17, %c0_18] : memref<8x8xf32, #tpu.memory_space<vmem>>, vector<8x8xf32>
    tpu.vector_store %arg8[%c0_17, %c0_18], %22 {strides = array<i32>} : memref<8x8xf32, #tpu.memory_space<vmem>>, vector<8x8xf32>,
    %24 = tpu.iota {dimensions = array<i32: 1>} : vector<8x128xi32>
    %cst_19 = arith.constant dense<0xFF800000> : vector<8xf32>
    %25 = vector.multi_reduction <maximumf>, %21, %cst_19 [1] : vector<8x128xf32> to vector<8xf32>
    %26 = vector.shape_cast %25 : vector<8xf32> to vector<8x1xf32>
    %27 = vector.broadcast %26 : vector<8x1xf32> to vector<8x128xf32>
    %28 = arith.cmpf oeq, %21, %27 : vector<8x128xf32>
    %c128_i32 = arith.constant 128 : i32
    %29 = vector.broadcast %c128_i32 : i32 to vector<8x128xi32>
    %30 = arith.select %28, %24, %29 : vector<8x128xi1>, vector<8x128xi32>
    %cst_20 = arith.constant dense<2147483647> : vector<8xi32>
    %31 = vector.multi_reduction <minsi>, %30, %cst_20 [1] : vector<8x128xi32> to vector<8xi32>
    %32 = vector.shape_cast %31 : vector<8xi32> to vector<8x1xi32>
    %c0_21 = arith.constant 0 : index
    %c0_22 = arith.constant 0 : index
    %33 = vector.load %arg9[%c0_21, %c0_22] : memref<8x1xi32, #tpu.memory_space<vmem>>, vector<8x1xi32>
    tpu.vector_store %arg9[%c0_21, %c0_22], %32 {strides = array<i32>} : memref<8x1xi32, #tpu.memory_space<vmem>>, vector<8x1xi32>,
    return
  }
  func.func @transform_0(%arg0: i32) -> (i32, i32) {
    %c0_i32 = arith.constant 0 : i32
    %c0_i32_0 = arith.constant 0 : i32
    return %arg0, %c0_i32 : i32, i32
  }
  func.func @transform_1(%arg0: i32) -> (i32, i32) {
    %c0_i32 = arith.constant 0 : i32
    %c0_i32_0 = arith.constant 0 : i32
    %c0_i32_1 = arith.constant 0 : i32
    return %c0_i32, %c0_i32_0 : i32, i32
  }
  func.func @transform_2(%arg0: i32) -> (i32, i32) {
    %c0_i32 = arith.constant 0 : i32
    %c0_i32_0 = arith.constant 0 : i32
    %c0_i32_1 = arith.constant 0 : i32
    return %c0_i32, %c0_i32_0 : i32, i32
  }
  func.func @transform_3(%arg0: i32) -> (i32, i32) {
    %c0_i32 = arith.constant 0 : i32
    %c0_i32_0 = arith.constant 0 : i32
    %c0_i32_1 = arith.constant 0 : i32
    return %c0_i32, %c0_i32_0 : i32, i32
  }
  func.func @transform_4(%arg0: i32) -> (i32, i32) {
    %c0_i32 = arith.constant 0 : i32
    %c0_i32_0 = arith.constant 0 : i32
    %c0_i32_1 = arith.constant 0 : i32
    return %c0_i32, %c0_i32_0 : i32, i32
  }
  func.func @transform_5(%arg0: i32) -> (i32, i32) {
    %c0_i32 = arith.constant 0 : i32
    %c0_i32_0 = arith.constant 0 : i32
    %c0_i32_1 = arith.constant 0 : i32
    return %c0_i32, %c0_i32_0 : i32, i32
  }
  func.func @transform_6(%arg0: i32) -> (i32, i32) {
    %c0_i32 = arith.constant 0 : i32
    %c0_i32_0 = arith.constant 0 : i32
    %c0_i32_1 = arith.constant 0 : i32
    return %c0_i32, %c0_i32_0 : i32, i32
  }
  func.func @transform_7(%arg0: i32) -> (i32, i32) {
    %c0_i32 = arith.constant 0 : i32
    %c0_i32_0 = arith.constant 0 : i32
    return %arg0, %c0_i32 : i32, i32
  }
  func.func @transform_8(%arg0: i32) -> (i32, i32) {
    %c0_i32 = arith.constant 0 : i32
    %c0_i32_0 = arith.constant 0 : i32
    return %arg0, %c0_i32 : i32, i32
  }
}

</mosaic_0001>

<bundles_post_ra>
// kernel: tpu_custom_call.1
= control target key start
LH: loop header
LB: loop body
LE: loop exit
PB: predicated region body
PF: predicated region fallthrough
CT: control target
= control target key end

     0   :  { %14 = vsyncpa [#allocation3], 0  ;;  %s790_s0 = inlined_call_operand.hbm [shape: bf16[8,64], index: 0, kind: input, shape index: {}]   ;;  %s791_s1 = inlined_call_operand.hbm [shape: bf16[64,128], index: 1, kind: input, shape index: {}]   ;;  %s792_s2 = inlined_call_operand.vmem [shape: f32[1,128], index: 2, kind: input, shape index: {}]   ;;  %s793_s3 = inlined_call_operand.hbm [shape: bf16[128,128], index: 3, kind: input, shape index: {}]   ;;  %s794_s4 = inlined_call_operand.vmem [shape: f32[1,128], index: 4, kind: input, shape index: {}]   ;;  %s795_s5 = inlined_call_operand.hbm [shape: bf16[128,128], index: 5, kind: input, shape index: {}]   ;;  %s796_s6 = inlined_call_operand.vmem [shape: f32[1,128], index: 6, kind: input, shape index: {}]   ;;  %s797_s7 = inlined_call_operand.hbm [shape: f32[8,8], index: 7, kind: output, shape index: {0}]   ;;  %s798_s8 = inlined_call_operand.vmem [shape: s32[8,1], index: 8, kind: output, shape index: {1}]  }
   0x1   :  { %15 = vsyncpa [#allocation6], 0 }
   0x2   :  { %16 = vsyncpa [#allocation9], 0 }
   0x3   :  { %17 = vsyncpa [#allocation4], 0  ;;  %s674_s27 = smov [#allocation5]  }
   0x4   :  { %s33_s28 = sshll.u32 %s674_s27, 4  ;;  %s34_s28 = int_to_ptr.vmem [resolvable:$true] %s33_s28 }
   0x5   :  { %s574_s29 = scalar_lea.vmem %s34_s28, 512  ;;  %p579_p1 = scmp.lt.s32.totalorder %s34_s28, %s34_s28 }
   0x6   :  { %p575_p0 = scmp.ne.s32.totalorder %s34_s28, %s574_s29  ;;  %p580_p2 = scmp.lt.s32.totalorder %s574_s29, %s574_s29 }
   0x8   :  { %p581_p3 = por %p580_p2, %p579_p1 }
   0xa   :  { %p582_p4 = pnand %p581_p3, %p575_p0 }
   0xc   :  { %585 = shalt.err (!%p582_p4)
}
   0xd   :  { %s675_s30 = smov 64   ;;  %s676_s9 = smov 4  }
   0xe   :  { %39 = dma.hbm_to_vmem [thread:$0]  %s791_s1, 512, %s34_s28, [#allocation6], %s675_s30, %s675_s30, %s676_s9  }
   0xf   :  { %s677_s12 = smov [#allocation2]   ;;  %s678_s14 = smov [#allocation7]  }
  0x10   :  { %s24_s13 = sshll.u32 %s677_s12, 4  ;;  %s47_s15 = sshll.u32 %s678_s14, 4  ;;  %s25_s13 = int_to_ptr.vmem [resolvable:$true] %s24_s13  ;;  %s48_s15 = int_to_ptr.vmem [resolvable:$true] %s47_s15 }
  0x11   :  { %s594_s16 = scalar_lea.vmem %s25_s13, 64  ;;  %p599_p6 = scmp.lt.s32.totalorder %s25_s13, %s25_s13 }
  0x12   :  { %p595_p5 = scmp.ne.s32.totalorder %s25_s13, %s594_s16  ;;  %p600_p7 = scmp.lt.s32.totalorder %s594_s16, %s594_s16 }
  0x14   :  { %p601_p8 = por %p600_p7, %p599_p6 }
  0x16   :  { %p602_p9 = pnand %p601_p8, %p595_p5 }
  0x18   :  { %605 = shalt.err (!%p602_p9)
}
  0x19   :  { %27 = dma.hbm_to_vmem [thread:$0]  %s790_s0, 64, %s25_s13, [#allocation3]  }
  0x1a   :  { %s614_s19 = scalar_lea.vmem %s48_s15, 1024  ;;  %p619_p11 = scmp.lt.s32.totalorder %s48_s15, %s48_s15 }
  0x1b   :  { %p615_p10 = scmp.ne.s32.totalorder %s48_s15, %s614_s19  ;;  %p620_p12 = scmp.lt.s32.totalorder %s614_s19, %s614_s19 }
  0x1d   :  { %p621_p13 = por %p620_p12, %p619_p11 }
  0x1f   :  { %p622_p0 = pnand %p621_p13, %p615_p10 }
  0x21   :  { %625 = shalt.err (!%p622_p0)
}
  0x22   :  { %53 = dma.hbm_to_vmem [thread:$0]  %s793_s3, 1024, %s48_s15, [#allocation6], %s675_s30, %s675_s30, %s676_s9  }
  0x23   :  { %s679_s21 = smov [#allocation8]  }
  0x24   :  { %s61_s22 = sshll.u32 %s679_s21, 4  ;;  %s62_s22 = int_to_ptr.vmem [resolvable:$true] %s61_s22 }
  0x25   :  { %s634_s23 = scalar_lea.vmem %s62_s22, 1024  ;;  %p639_p2 = scmp.lt.s32.totalorder %s62_s22, %s62_s22 }
  0x26   :  { %p635_p1 = scmp.ne.s32.totalorder %s62_s22, %s634_s23  ;;  %p640_p3 = scmp.lt.s32.totalorder %s634_s23, %s634_s23 }
  0x28   :  { %p641_p4 = por %p640_p3, %p639_p2 }
  0x2a   :  { %p642_p5 = pnand %p641_p4, %p635_p1 }
  0x2c   :  { %645 = shalt.err (!%p642_p5)
}
  0x2d   :  { %67 = dma.hbm_to_vmem [thread:$0]  %s795_s5, 1024, %s62_s22, [#allocation9], %s675_s30, %s675_s30, %s676_s9  }
  0x2e   :  { %666 = dma.done.wait [#allocation3], 64  }
  0x2f   :  { %667 = vsyncadd [#allocation3], 4294967232 }
  0x30   :  { %668 = dma.done.wait [#allocation6], 1536  }
  0x31   :  { %669 = vsyncadd [#allocation6], 4294965760 }
  0x32   :  { %670 = dma.done.wait [#allocation9], 1024  }
  0x33   :  { %671 = vsyncadd [#allocation9], 4294966272  ;;  %v680_v0 = vmov 0.0   ;;  %vm681_vm0 = vmmov 0   ;;  %v546_v1 = vld [vmem:[#allocation5 + $0x18] sm:$0xff]   ;;  %v547_v2 = vld [vmem:[#allocation5 + $0x10] sm:$0xff]   ;;  %v395_v44 = vlaneseq }
  0x34   :  { %485 = vmatprep.subr.bf16.mxu0 %v680_v0  ;;  %493 = vmatprep.mubr.msk.bf16.mxu0 %vm681_vm0, %v680_v0  ;;  %v550_v3 = vld [vmem:[#allocation7 + $0x38] sm:$0xff]   ;;  %v548_v4 = vld [vmem:[#allocation5 + $0x8] sm:$0xff]   ;;  %v551_v5 = vld [vmem:[#allocation7 + $0x30] sm:$0xff]   ;;  %vm123_vm1 = vcmask 523264   ;;  %vm393_vm2 = vcmask 64512  }
  0x35   :  { %497 = vmatprep.subr.bf16.mxu1 %v680_v0  ;;  %513 = vmatprep.mubr.msk.bf16.mxu1 %vm681_vm0, %v680_v0  ;;  %v549_v6 = vld [vmem:[#allocation5] sm:$0xff]   ;;  %v552_v7 = vld [vmem:[#allocation7 + $0x28] sm:$0xff]   ;;  %v83_v8 = vld [vmem:[#allocation2] sm:$0xf]  ;;  %v396_v45 = vand.u32 127, %v395_v44 }
  0x36   :  { %486 = vmatpush3.bf16.msra.mxu0 %v546_v1  ;;  %498 = vmatpush3.bf16.msra.mxu1 %v550_v3  ;;  %v553_v9 = vld [vmem:[#allocation7 + $0x20] sm:$0xff]   ;;  %v554_v10 = vld [vmem:[#allocation7 + $0x18] sm:$0xff]   ;;  %v555_v11 = vld [vmem:[#allocation7 + $0x10] sm:$0xff]  }
  0x37   :  { %487 = vmatprep.subr.bf16.mxu0 %v680_v0  ;;  %499 = vmatprep.subr.bf16.mxu1 %v680_v0  ;;  %v556_v12 = vld [vmem:[#allocation7 + $0x8] sm:$0xff]   ;;  %v557_v13 = vld [vmem:[#allocation7] sm:$0xff]   ;;  %v558_v14 = vld [vmem:[#allocation8 + $0x38] sm:$0xff]  }
  0x38   :  { %v559_v15 = vld [vmem:[#allocation8 + $0x30] sm:$0xff]   ;;  %v560_v16 = vld [vmem:[#allocation8 + $0x28] sm:$0xff]   ;;  %v561_v17 = vld [vmem:[#allocation8 + $0x20] sm:$0xff]  }
  0x39   :  { %v562_v18 = vld [vmem:[#allocation8 + $0x18] sm:$0xff]   ;;  %v563_v19 = vld [vmem:[#allocation8 + $0x10] sm:$0xff]   ;;  %v564_v28 = vld [vmem:[#allocation8 + $0x8] sm:$0xff]  }
  0x3a   :  { %488 = vmatpush3.bf16.msra.mxu0 %v547_v2  ;;  %500 = vmatpush3.bf16.msra.mxu1 %v551_v5  ;;  %v438_v20 = vld [vmem:[%s792_s2] ss:$0 sm:$0xff]  ;;  %v565_v29 = vld [vmem:[#allocation8] sm:$0xff]  }
  0x3b   :  { %489 = vmatprep.subr.bf16.mxu0 %v680_v0  ;;  %501 = vmatprep.subr.bf16.mxu1 %v680_v0  ;;  %v444_v30 = vld [vmem:[%s794_s4] ss:$0 sm:$0xff]  ;;  %s682_s4 = smov [#allocation10]  }
  0x3c   :  { %v453_v38 = vld [vmem:[%s796_s6] ss:$0 sm:$0xff]  ;;  %s423_s6 = sshll.u32 %s682_s4, 4  ;;  %s424_s6 = int_to_ptr.vmem [resolvable:$true] %s423_s6 }
  0x3d   :  { %s646_s28 = scalar_lea.vmem %s424_s6, 128  ;;  %p651_p7 = scmp.lt.s32.totalorder %s424_s6, %s424_s6 }
  0x3e   :  { %490 = vmatpush3.bf16.msra.mxu0 %v548_v4  ;;  %502 = vmatpush3.bf16.msra.mxu1 %v552_v7  ;;  %p647_p6 = scmp.ne.s32.totalorder %s424_s6, %s646_s28  ;;  %p652_p8 = scmp.lt.s32.totalorder %s646_s28, %s646_s28 }
  0x3f   :  { %491 = vmatprep.subr.bf16.mxu0 %v680_v0  ;;  %503 = vmatprep.subr.bf16.mxu1 %v680_v0 }
  0x40   :  { %p653_p9 = por %p652_p8, %p651_p7 }
  0x42   :  { %492 = vmatpush3.bf16.msra.mxu0 %v549_v6  ;;  %504 = vmatpush3.bf16.msra.mxu1 %v553_v9  ;;  %p654_p10 = pnand %p653_p9, %p647_p6 }
  0x43   :  { %517 = vmatprep.subr.bf16.mxu0 %v680_v0  ;;  %505 = vmatprep.subr.bf16.mxu1 %v680_v0 }
  0x45   :  { %494 = vmatmul.mubr.msk.bf16.vlgmr.msra.gmra.mxu0 %vm123_vm1, %v83_v8 }
  0x46   :  { %533 = vmatprep.mubr.msk.bf16.mxu0 %vm681_vm0, %v680_v0  ;;  %506 = vmatpush3.bf16.msra.mxu1 %v554_v10 }
  0x47   :  { %507 = vmatprep.subr.bf16.mxu1 %v680_v0  ;;  %518 = vmatpush3.bf16.msra.mxu0 %v558_v14 }
  0x48   :  { %519 = vmatprep.subr.bf16.mxu0 %v680_v0 }
  0x4a   :  { %508 = vmatpush3.bf16.msra.mxu1 %v555_v11 }
  0x4b   :  { %509 = vmatprep.subr.bf16.mxu1 %v680_v0  ;;  %520 = vmatpush3.bf16.msra.mxu0 %v559_v15 }
  0x4c   :  { %521 = vmatprep.subr.bf16.mxu0 %v680_v0 }
  0x4e   :  { %510 = vmatpush3.bf16.msra.mxu1 %v556_v12 }
  0x4f   :  { %511 = vmatprep.subr.bf16.mxu1 %v680_v0  ;;  %522 = vmatpush3.bf16.msra.mxu0 %v560_v16 }
  0x50   :  { %523 = vmatprep.subr.bf16.mxu0 %v680_v0 }
  0x52   :  { %512 = vmatpush3.bf16.msra.mxu1 %v557_v13 }
  0x53   :  { %524 = vmatpush3.bf16.msra.mxu0 %v561_v17 }
  0x54   :  { %525 = vmatprep.subr.bf16.mxu0 %v680_v0 }
  0x57   :  { %526 = vmatpush3.bf16.msra.mxu0 %v562_v18 }
  0x58   :  { %527 = vmatprep.subr.bf16.mxu0 %v680_v0 }
  0x5b   :  { %528 = vmatpush3.bf16.msra.mxu0 %v563_v19 }
  0x5c   :  { %529 = vmatprep.subr.bf16.mxu0 %v680_v0 }
  0x5f   :  { %530 = vmatpush3.bf16.msra.mxu0 %v564_v28 }
  0x60   :  { %531 = vmatprep.subr.bf16.mxu0 %v680_v0 }
  0x63   :  { %532 = vmatpush3.bf16.msra.mxu0 %v565_v29 }
 0x105   :  { %v161_v21 = vpop.f32.mrf.mxu0 }
 0x106   :  { %v162_v22 = vadd.f32 %v438_v20, %v161_v21 }
 0x107   :  { %v495_v23 = vpop.f32.mrf.mxu0 }
 0x108   :  { %v167_v24 = vmax.f32 %v162_v22, 0.0 }
 0x109   :  { %v164_v25 = vpop.f32.mrf.mxu0 }
 0x10a   :  { %v168_v26 = vpack.c.bf16 %v167_v24, %v167_v24 }
 0x10b   :  { %v496_v27 = vpop.f32.mrf.mxu0 }
 0x10c   :  { %514 = vmatmul.mubr.bf16.vlgmr.msra.gmra.mxu1 %v168_v26 }
 0x1cc   :  { %v274_v31 = vpop.f32.mrf.mxu1 }
 0x1cd   :  { %v275_v32 = vadd.f32 %v444_v30, %v274_v31 }
 0x1ce   :  { %v515_v33 = vpop.f32.mrf.mxu1 }
 0x1cf   :  { %v280_v34 = vmax.f32 %v275_v32, 0.0 }
 0x1d0   :  { %v277_v35 = vpop.f32.mrf.mxu1 }
 0x1d1   :  { %v281_v36 = vpack.c.bf16 %v280_v34, %v280_v34 }
 0x1d2   :  { %v516_v37 = vpop.f32.mrf.mxu1 }
 0x1d3   :  { %534 = vmatmul.mubr.bf16.vlgmr.msra.gmra.mxu0 %v281_v36 }
 0x293   :  { %v387_v39 = vpop.f32.mrf.mxu0 }
 0x294   :  { %v388_v40 = vadd.f32 %v453_v38, %v387_v39 }
 0x295   :  { %v535_v41 = vpop.f32.mrf.mxu0 }
 0x296   :  { %397 = vmax.xlane.f32.xlu0 %v388_v40  ;;  %394 = vst.msk [vmem:[#allocation10] sm:$0xff] %vm393_vm2, %v388_v40 }
 0x297   :  { %v390_v42 = vpop.f32.mrf.mxu0 }
 0x299   :  { %v536_v43 = vpop.f32.mrf.mxu0 }
 0x31f   :  { %v398_v46 = vpop.xlane.xlu0 %397 }
 0x320   :  { %vm399_vm3 = vcmp.eq.f32.partialorder %v388_v40, %v398_v46 }
 0x321   :  { %v400_v47 = vsel %vm399_vm3, %v396_v45, 128 }
 0x322   :  { %v402_v48 = vshra.s32 %v400_v47, 16  ;;  %v401_v50 = vand.u32 65535, %v400_v47 }
 0x324   :  { %v404_v49 = vcvt.s32.f32 %v402_v48  ;;  %v403_v52 = vcvt.s32.f32 %v401_v50 }
 0x326   :  { %405 = vmin.xlane.f32.xlu0 %v404_v49 }
 0x3af   :  { %v406_v51 = vpop.xlane.xlu0 %405 }
 0x3b0   :  { %vm407_vm4 = vcmp.eq.f32.partialorder %v404_v49, %v406_v51 }
 0x3b1   :  { %v408_v53 = vsel %vm407_vm4, %v403_v52, inf }
 0x3b2   :  { %409 = vmin.xlane.f32.xlu1 %v408_v53 }
 0x3b3   :  { %657 = shalt.err (!%p654_p10)
}
 0x3b4   :  { %426 = dma.vmem_to_hbm [thread:$0]  %s424_s6, 128, %s797_s7, [#allocation4]   ;;  %v412_v54 = vcvt.f32.s32 %v406_v51  ;;  %vm415_vm5 = vcmask 7168  }
 0x3b6   :  { %v413_v56 = vshll.u32 %v412_v54, 16 }
 0x43b   :  { %v410_v55 = vpop.xlane.xlu1 %409 }
 0x43c   :  { %v411_v57 = vcvt.f32.s32 %v410_v55 }
 0x43e   :  { %v414_v58 = vadd.s32 %v413_v56, %v411_v57 }
 0x440   :  { %416 = vst.msk [vmem:[%s798_s8] sm:$0xff] %vm415_vm5, %v414_v58 }
 0x441   :  { %672 = dma.done.wait [#allocation4], 128  }
 0x442   :  { %673 = vsyncadd [#allocation4], 4294967168 }
 0x443   :  { %434 = vsyncpa [#allocation3], 1 }
 0x444   :  { %435 = vsyncpa [#allocation6], 1 }
 0x445   :  { %436 = vsyncpa [#allocation9], 1 }
 0x446   :  { %437 = vsyncpa [#allocation4], 1 }

</bundles_post_ra>
